<compile_context>
chip_gen: v6e
topology: v6e:2x2x1
jax: 0.10.0
libtpu: 0.0.40
codegen_flags: <defaults>
</compile_context>

<pallas_src>
import functools

import jax
import jax.numpy as jnp
from jax import lax
from jax.experimental import pallas as pl
from jax.experimental.pallas import tpu as pltpu

_MiB = 1024 * 1024
# Weights at or below this size are kept fully resident in VMEM for the call.
_WEIGHT_RESIDENT_BYTES = 8 * _MiB
# Scoped-VMEM request: covers the big-tile path on v5e (16 MiB scoped default)
# and the ~28 MiB weight-resident worst case, while leaving ~25% headroom on
# v7x (64 MiB physical per TensorCore).
_VMEM_LIMIT = 48 * _MiB
# VMEM budget for the (double-buffered) x + out blocks in the resident path.
_XO_BUDGET = 12 * _MiB


def _round_up(x: int, m: int) -> int:
    return (x + m - 1) // m * m


def _sublane(dtype) -> int:
    # f32: 8, bf16: 16, int8/fp8: 32 (sub-32-bit dtypes pack along sublanes).
    return max(8, 32 // jnp.dtype(dtype).itemsize)


# --------------------------------------------------------------------------
# Kernel bodies
# --------------------------------------------------------------------------
def _linear_tanh_wres_kernel(x_ref, wt_ref, o_ref):
    # x block: (tm, K); wt block: (K, N), resident in VMEM (constant index_map
    # -> DMA'd from HBM once for the whole call).  Plain MXU matmul, f32 acc.
    o_ref[...] = jnp.tanh(
        jnp.dot(x_ref[...], wt_ref[...], preferred_element_type=jnp.float32)
    ).astype(o_ref.dtype)


def _linear_tanh_tiled_kernel(x_ref, w_ref, o_ref, acc_ref):
    # Grid: (M//tm, N//tn, K//tk); reduction axis K is last ("arbitrary").
    @pl.when(pl.program_id(2) == 0)
    def _():
        acc_ref[...] = jnp.zeros_like(acc_ref)

    # x block: (tm, tk); weight block: (tn, tk) in PyTorch (out, in) layout.
    # Contracting dim 1 of both operands is the same transposed-RHS pattern as
    # Q.K^T in flash attention -> MXU-native, no per-step XLU transpose.
    acc_ref[...] += lax.dot_general(
        x_ref[...],
        w_ref[...],
        dimension_numbers=(((1,), (1,)), ((), ())),
        preferred_element_type=jnp.float32,
    )

    @pl.when(pl.program_id(2) == pl.num_programs(2) - 1)
    def _():
        o_ref[...] = jnp.tanh(acc_ref[...]).astype(o_ref.dtype)


# --------------------------------------------------------------------------
# Wrappers
# --------------------------------------------------------------------------
def _forward_weight_resident(x, weight, out_dtype, sub, isz):
    """Weight fits VMEM: grid over M only, weight DMA'd to VMEM once."""
    B, K = x.shape
    N = weight.shape[0]

    # One-time (K, N) relayout of the *small* weight (<= 8 MiB): a single
    # cheap HBM pass that lets the kernel run a plain lane-dense MXU matmul
    # with no in-kernel transposes.  (The tiled path never relays out the
    # weight.)
    w_t = weight.T

    # M tile: as large as the x/out double-buffer budget allows, up to 2048.
    tm = min(2048, _round_up(B, sub))
    while tm > sub and 2 * tm * (K + N) * isz > _XO_BUDGET:
        tm //= 2
    tm = max(sub, _round_up(tm, sub))

    grid_m = pl.cdiv(B, tm)
    # v7x megacore: if there is only one M block but more than one sublane
    # tile of rows, split M so both TensorCores get work.
    if grid_m == 1 and B > sub:
        tm = max(sub, _round_up(pl.cdiv(B, 2), sub))
        grid_m = pl.cdiv(B, tm)

    return pl.pallas_call(
        _linear_tanh_wres_kernel,
        out_shape=jax.ShapeDtypeStruct((B, N), out_dtype),
        grid_spec=pltpu.PrefetchScalarGridSpec(
            num_scalar_prefetch=0,
            grid=(grid_m,),
            in_specs=[
                pl.BlockSpec((tm, K), lambda i: (i, 0)),
                # Constant block index -> the weight is copied to VMEM once.
                pl.BlockSpec((K, N), lambda i: (0, 0)),
            ],
            out_specs=pl.BlockSpec((tm, N), lambda i: (i, 0)),
        ),
        compiler_params=pltpu.CompilerParams(
            dimension_semantics=("parallel",),
            vmem_limit_bytes=_VMEM_LIMIT,
        ),
    )(x, w_t)


def _forward_tiled(x, weight, out_dtype, sub, isz):
    """Large weight: classic (M, N, K) tiled matmul with f32 accumulator."""
    B, K = x.shape
    N = weight.shape[0]

    tm = min(512, _round_up(B, sub))
    tn = min(1024, _round_up(N, 128))
    tk_max = 2048 if isz <= 2 else 1024

    if K <= tk_max:
        # Single full-extent K block: no padding, correct even if K is not a
        # multiple of 128 (full-array block dims are exempt).
        Kp, tk = K, K
    else:
        # Pad K only to hardware granularity (128) and pick tk as an exact
        # divisor of the padded K, so no tail block ever accumulates garbage
        # and there is no tile-multiple over-padding.
        Kp = _round_up(K, 128)
        q = Kp // 128
        d = max(dd for dd in range(1, tk_max // 128 + 1) if q % dd == 0)
        tk = 128 * d
        if Kp != K:
            x = jnp.pad(x, ((0, 0), (0, Kp - K)))
            weight = jnp.pad(weight, ((0, 0), (0, Kp - K)))

    grid_m = pl.cdiv(B, tm)
    grid_n = pl.cdiv(N, tn)
    # v7x megacore: make sure the parallel axes expose >= 2 blocks if possible.
    if grid_m * grid_n == 1:
        if N > 128:
            tn = _round_up(pl.cdiv(N, 2), 128)
            grid_n = pl.cdiv(N, tn)
        elif B > sub:
            tm = _round_up(pl.cdiv(B, 2), sub)
            grid_m = pl.cdiv(B, tm)
    grid_k = Kp // tk

    return pl.pallas_call(
        _linear_tanh_tiled_kernel,
        out_shape=jax.ShapeDtypeStruct((B, N), out_dtype),
        grid_spec=pltpu.PrefetchScalarGridSpec(
            num_scalar_prefetch=0,
            grid=(grid_m, grid_n, grid_k),
            in_specs=[
                pl.BlockSpec((tm, tk), lambda i, j, k: (i, k)),
                pl.BlockSpec((tn, tk), lambda i, j, k: (j, k)),
            ],
            out_specs=pl.BlockSpec((tm, tn), lambda i, j, k: (i, j)),
            scratch_shapes=[pltpu.VMEM((tm, tn), jnp.float32)],
        ),
        compiler_params=pltpu.CompilerParams(
            dimension_semantics=("parallel", "parallel", "arbitrary"),
            vmem_limit_bytes=_VMEM_LIMIT,
        ),
    )(x, weight)


@functools.partial(jax.jit, static_argnames=("mxu_dtype", "force_tiled"))
def linear_block_forward(x, weight, *, mxu_dtype=None, force_tiled=False):
    """x: (B, in_ch); weight: (out_ch, in_ch) (PyTorch layout).

    Returns tanh(x @ weight.T), shape (B, out_ch), in x's dtype.
    `mxu_dtype=jnp.bfloat16` optionally runs the matmul in bf16 (f32 acc).
    """
    assert x.ndim == 2 and weight.ndim == 2
    B, K = x.shape
    N, K2 = weight.shape
    assert K == K2, "in_channels mismatch"
    out_dtype = x.dtype

    if mxu_dtype is not None:
        x = x.astype(mxu_dtype)
        weight = weight.astype(mxu_dtype)
    elif weight.dtype != x.dtype:
        # Avoid silent mixed-dtype promotion inside the kernel.
        weight = weight.astype(x.dtype)

    isz = jnp.dtype(x.dtype).itemsize
    sub = _sublane(x.dtype)
    w_bytes = N * K * isz

    if (not force_tiled) and w_bytes <= _WEIGHT_RESIDENT_BYTES:
        return _forward_weight_resident(x, weight, out_dtype, sub, isz)
    return _forward_tiled(x, weight, out_dtype, sub, isz)


def linear_block(x, weight, *, skip_connection=None):
    x1 = linear_block_forward(x, weight)
    if skip_connection == "concat":
        # torch.cat([x, x1], axis=1) — plain glue in the wrapper.
        x1 = jnp.concatenate([x, x1], axis=1)
    return x1


if __name__ == "__main__":
    key = jax.random.PRNGKey(0)
    k_x, k_w, k_x2, k_w2 = jax.random.split(key, 4)

    # --- Small MLP-sized LinearBlock: weight-resident path, no padding, no
    # --- output slicing (exercises the small-shape fast path). --------------
    batch, in_ch, out_ch = 8, 32, 64
    x = jax.random.normal(k_x, (batch, in_ch), dtype=jnp.float32)
    # Deterministic init mimicking torch.nn.Linear: U(-1/sqrt(in), 1/sqrt(in)).
    bound = 1.0 / jnp.sqrt(jnp.float32(in_ch))
    weight = jax.random.uniform(
        k_w, (out_ch, in_ch), minval=-bound, maxval=bound, dtype=jnp.float32
    )

    out = jax.block_until_ready(linear_block(x, weight))
    ref = jnp.tanh(x @ weight.T)
    assert out.shape == (batch, out_ch)
    assert jnp.allclose(out, ref, atol=1e-4, rtol=1e-4)

    # Optional 'concat' skip-connection path.
    out_cat = jax.block_until_ready(linear_block(x, weight, skip_connection="concat"))
    ref_cat = jnp.concatenate([x, ref], axis=1)
    assert out_cat.shape == (batch, in_ch + out_ch)
    assert jnp.allclose(out_cat, ref_cat, atol=1e-4, rtol=1e-4)

    # --- Tiled (large-weight) path, forced on a small unaligned shape to
    # --- exercise partial boundary blocks and the f32 accumulator. ----------
    b2, k2, n2 = 40, 300, 200
    x2 = jax.random.normal(k_x2, (b2, k2), dtype=jnp.float32)
    w2 = jax.random.normal(k_w2, (n2, k2), dtype=jnp.float32) * 0.05
    out2 = jax.block_until_ready(linear_block_forward(x2, w2, force_tiled=True))
    ref2 = jnp.tanh(x2 @ w2.T)
    assert out2.shape == (b2, n2)
    assert jnp.allclose(out2, ref2, atol=1e-4, rtol=1e-4)

    print("KERNEL_OK")
</pallas_src>

<mosaic_0001>
module attributes {stable_mosaic.version = 11 : i64} {
  func.func @_linear_tanh_wres_kernel(%arg0: i32, %arg1: memref<8x32xf32, #tpu.memory_space<vmem>>, %arg2: memref<32x64xf32, #tpu.memory_space<vmem>>, %arg3: memref<8x64xf32, #tpu.memory_space<vmem>>) attributes {dimension_semantics = [#tpu.dimension_semantics<parallel>], iteration_bounds = array<i64: 1>, scalar_prefetch = 0 : i64, scratch_operands = 0 : i64, tpu.core_type = #tpu.core_type<tc>, window_params = [{transform_indices = @transform_0, window_bounds = array<i64: 8, 32>}, {pipeline_mode = #tpu.pipeline_mode<synchronous>, transform_indices = @transform_1, window_bounds = array<i64: 32, 64>}, {transform_indices = @transform_2, window_bounds = array<i64: 8, 64>}]} {
    %c0 = arith.constant 0 : index
    %c0_0 = arith.constant 0 : index
    %0 = vector.load %arg1[%c0, %c0_0] : memref<8x32xf32, #tpu.memory_space<vmem>>, vector<8x32xf32>
    %c0_1 = arith.constant 0 : index
    %c0_2 = arith.constant 0 : index
    %1 = vector.load %arg2[%c0_1, %c0_2] : memref<32x64xf32, #tpu.memory_space<vmem>>, vector<32x64xf32>
    %cst = arith.constant dense<0.000000e+00> : vector<8x64xf32>
    %2 = tpu.matmul %0, %1, %cst {dimension_numbers = #tpu.dot_dimension_numbers<[1], [0], [0], [1], [0, 0, 1, 1], [], []>} : vector<8x32xf32>, vector<32x64xf32>, vector<8x64xf32> -> vector<8x64xf32>
    %3 = math.tanh %2 : vector<8x64xf32>
    %c0_3 = arith.constant 0 : index
    %c0_4 = arith.constant 0 : index
    %4 = vector.load %arg3[%c0_3, %c0_4] : memref<8x64xf32, #tpu.memory_space<vmem>>, vector<8x64xf32>
    tpu.vector_store %arg3[%c0_3, %c0_4], %3 {strides = array<i32>} : memref<8x64xf32, #tpu.memory_space<vmem>>, vector<8x64xf32>,
    return
  }
  func.func @transform_0(%arg0: i32) -> (i32, i32) {
    %c0_i32 = arith.constant 0 : i32
    %c0_i32_0 = arith.constant 0 : i32
    return %arg0, %c0_i32 : i32, i32
  }
  func.func @transform_1(%arg0: i32) -> (i32, i32) {
    %c0_i32 = arith.constant 0 : i32
    %c0_i32_0 = arith.constant 0 : i32
    %c0_i32_1 = arith.constant 0 : i32
    return %c0_i32, %c0_i32_0 : i32, i32
  }
  func.func @transform_2(%arg0: i32) -> (i32, i32) {
    %c0_i32 = arith.constant 0 : i32
    %c0_i32_0 = arith.constant 0 : i32
    return %arg0, %c0_i32 : i32, i32
  }
}

</mosaic_0001>

<bundles_post_ra>
// kernel: linear_block_forward.1
= control target key start
LH: loop header
LB: loop body
LE: loop exit
PB: predicated region body
PF: predicated region fallthrough
CT: control target
= control target key end

     0   :  { %7 = vsyncpa [#allocation3], 0  ;;  %s259_s0 = inlined_call_operand.hbm [shape: f32[8,32], index: 0, kind: input, shape index: {}]   ;;  %s260_s1 = inlined_call_operand.hbm [shape: f32[32,64], index: 1, kind: input, shape index: {}]   ;;  %s261_s2 = inlined_call_operand.hbm [shape: f32[8,64], index: 2, kind: output, shape index: {}]  }
   0x1   :  { %8 = vsyncpa [#allocation6], 0 }
   0x2   :  { %9 = vsyncpa [#allocation4], 0  ;;  %s228_s9 = smov [#allocation2]   ;;  %s229_s11 = smov [#allocation5]  }
   0x3   :  { %s16_s10 = sshll.u32 %s228_s9, 4  ;;  %s25_s12 = sshll.u32 %s229_s11, 4  ;;  %s17_s10 = int_to_ptr.vmem [resolvable:$true] %s16_s10  ;;  %s26_s12 = int_to_ptr.vmem [resolvable:$true] %s25_s12 }
   0x4   :  { %s170_s13 = scalar_lea.vmem %s17_s10, 128  ;;  %p175_p1 = scmp.lt.s32.totalorder %s17_s10, %s17_s10 }
   0x5   :  { %p171_p0 = scmp.ne.s32.totalorder %s17_s10, %s170_s13  ;;  %p176_p2 = scmp.lt.s32.totalorder %s170_s13, %s170_s13 }
   0x7   :  { %p177_p3 = por %p176_p2, %p175_p1 }
   0x9   :  { %p178_p4 = pnand %p177_p3, %p171_p0 }
   0xb   :  { %181 = shalt.err (!%p178_p4)
}
   0xc   :  { %19 = dma.hbm_to_vmem [thread:$0]  %s259_s0, 128, %s17_s10, [#allocation3]  }
   0xd   :  { %s190_s16 = scalar_lea.vmem %s26_s12, 512  ;;  %p195_p6 = scmp.lt.s32.totalorder %s26_s12, %s26_s12 }
   0xe   :  { %p191_p5 = scmp.ne.s32.totalorder %s26_s12, %s190_s16  ;;  %p196_p7 = scmp.lt.s32.totalorder %s190_s16, %s190_s16 }
  0x10   :  { %p197_p8 = por %p196_p7, %p195_p6 }
  0x12   :  { %p198_p9 = pnand %p197_p8, %p191_p5 }
  0x14   :  { %201 = shalt.err (!%p198_p9)
}
  0x15   :  { %s230_s17 = smov 128   ;;  %s231_s18 = smov 8  }
  0x16   :  { %31 = dma.hbm_to_vmem [thread:$0]  %s260_s1, 512, %s26_s12, [#allocation6], %s230_s17, %s230_s17, %s231_s18  }
  0x17   :  { %222 = dma.done.wait [#allocation3], 128  }
  0x18   :  { %223 = vsyncadd [#allocation3], 4294967168 }
  0x19   :  { %224 = dma.done.wait [#allocation6], 512  }
  0x1a   :  { %225 = vsyncadd [#allocation6], 4294966784  ;;  %v232_v0 = vmov 0.0   ;;  %vm233_vm0 = vmmov 0   ;;  %v42_v1 = vld [vmem:[#allocation5 + $0x18] sm:$0xff]  ;;  %v41_v2 = vld [vmem:[#allocation5 + $0x10] sm:$0xff] }
  0x1b   :  { %142 = vmatprep.subr.mxu0 %v232_v0  ;;  %150 = vmatprep.mubr.msk.f32.mxu0 %vm233_vm0, %v232_v0  ;;  %v40_v3 = vld [vmem:[#allocation5 + $0x8] sm:$0xff]  ;;  %v39_v4 = vld [vmem:[#allocation5] sm:$0xff]  ;;  %v38_v5 = vld [vmem:[#allocation2] sm:$0xff]  ;;  %vm43_vm1 = vcmask 261120   ;;  %s234_s0 = smov [#allocation7]   ;;  %vm118_vm2 = vcmask 523264  }
  0x1c   :  { %143 = vmatpush3.msra.mxu0 %v42_v1  ;;  %s126_s1 = sshll.u32 %s234_s0, 4  ;;  %s127_s1 = int_to_ptr.vmem [resolvable:$true] %s126_s1 }
  0x1d   :  { %144 = vmatprep.subr.mxu0 %v232_v0  ;;  %s202_s21 = scalar_lea.vmem %s127_s1, 128  ;;  %p207_p11 = scmp.lt.s32.totalorder %s127_s1, %s127_s1 }
  0x1e   :  { %145 = vmatpush3.msra.mxu0 %v41_v2  ;;  %p203_p10 = scmp.ne.s32.totalorder %s127_s1, %s202_s21  ;;  %p208_p12 = scmp.lt.s32.totalorder %s202_s21, %s202_s21 }
  0x1f   :  { %146 = vmatprep.subr.mxu0 %v232_v0 }
  0x20   :  { %147 = vmatpush3.msra.mxu0 %v40_v3  ;;  %p209_p13 = por %p208_p12, %p207_p11 }
  0x21   :  { %148 = vmatprep.subr.mxu0 %v232_v0 }
  0x22   :  { %149 = vmatpush3.msra.mxu0 %v39_v4  ;;  %p210_p0 = pnand %p209_p13, %p203_p10 }
  0x23   :  { %151 = vmatmul.mubr.msk.f32.vlgmr.msra.gmra.mxu0 %vm43_vm1, %v38_v5 }
  0xe3   :  { %v113_v6 = vpop.f32.mrf.mxu0 }
  0xe4   :  { %160 = vtanh.f32 %v113_v6 }
  0xe5   :  { %v152_v7 = vpop.f32.mrf.mxu0 }
  0xf1   :  { %v161_v8 = vpop.eup %160 }
  0xf2   :  { %119 = vst.msk [vmem:[#allocation7] sm:$0xff] %vm118_vm2, %v161_v8 }
  0xf3   :  { %213 = shalt.err (!%p210_p0)
}
  0xf4   :  { %129 = dma.vmem_to_hbm [thread:$0]  %s127_s1, 128, %s261_s2, [#allocation4]  }
  0xf5   :  { %226 = dma.done.wait [#allocation4], 128  }
  0xf6   :  { %227 = vsyncadd [#allocation4], 4294967168 }
  0xf7   :  { %133 = vsyncpa [#allocation3], 1 }
  0xf8   :  { %134 = vsyncpa [#allocation6], 1 }
  0xf9   :  { %135 = vsyncpa [#allocation4], 1 }

</bundles_post_ra>
